<compile_context>
chip_gen: v5e
topology: v5e:2x2
jax: 0.10.0
libtpu: 0.0.40
codegen_flags: <defaults>
</compile_context>

<pallas_src>
import functools

import jax
import jax.numpy as jnp
from jax.experimental import pallas as pl
from jax.experimental.pallas import tpu as pltpu


def flip_loss_kernel(lam_ref, b_ref, pred_ref, true_ref, w_ref, o_ref,
                     mse_acc, clf_acc, *, batch, hidden, tile_b, nb_half):
    c = pl.program_id(0)            # batch chunk (parallel axis -> per core)
    i = pl.program_id(1)            # tile within the chunk (arbitrary axis)

    @pl.when(i == 0)
    def _init():
        mse_acc[...] = jnp.zeros_like(mse_acc)
        clf_acc[...] = jnp.zeros_like(clf_acc)

    pred_raw = pred_ref[...]                        # original dtype (f32/bf16)
    pred = pred_raw.astype(jnp.float32)
    tru = true_ref[...].astype(jnp.float32)

    # ---- MSE partial: per-row sums (lane reduce only; no per-step sublane
    #      reduce and no (1,1) scalar read-modify-write). ----
    diff = pred - tru
    row_sq = jnp.sum(diff * diff, axis=-1, keepdims=True)            # [tile_b,1]

    # ---- Classifier projection on the (otherwise idle) MXU.
    #      w_ref is (H,128): column 0 holds the weights, rest zeros. ----
    proj = jnp.dot(pred_raw, w_ref[...], preferred_element_type=jnp.float32)
    logits = proj[:, 0:1] + b_ref[0]                                  # [tile_b,1]
    # BCELoss(sigmoid(x), 0) element == softplus(x); stable form, 2 EUP pushes.
    # TODO(synk): PyTorch's f32 sigmoid saturates for logits >= ~16.6, so its
    # BCELoss clamp returns exactly 100 there; softplus returns the exact value
    # instead (identical for realistic logit magnitudes).
    sp = jnp.maximum(logits, 0.0) + jnp.log1p(jnp.exp(-jnp.abs(logits)))
    neg_log1mp = jnp.minimum(sp, 100.0)                               # [tile_b,1]

    full_tiles = batch // tile_b          # tiles where every row is valid
    total_tiles = 2 * nb_half             # tiles covered by the 2-chunk grid

    if full_tiles == total_tiles:
        # Batch divides the grid coverage exactly: no masking anywhere.
        mse_acc[...] += row_sq
        clf_acc[...] += neg_log1mp
    else:
        t = c * nb_half + i               # logical (unclamped) tile index

        @pl.when(t < full_tiles)
        def _full_tile():
            mse_acc[...] += row_sq
            clf_acc[...] += neg_log1mp

        @pl.when(t >= full_tiles)
        def _tail_tile():
            # Partial or fully-out-of-range tile: mask the per-row partials.
            row_ids = t * tile_b + jax.lax.broadcasted_iota(
                jnp.int32, (tile_b, 1), 0)
            valid = row_ids < batch
            mse_acc[...] += jnp.where(valid, row_sq, 0.0)
            clf_acc[...] += jnp.where(valid, neg_log1mp, 0.0)

    @pl.when(i == pl.num_programs(1) - 1)
    def _finalize():
        lam = lam_ref[0]                                        # runtime scalar
        base = jnp.sum(mse_acc[...], keepdims=True) * (1.0 / float(batch * hidden))
        clf = jnp.sum(clf_acc[...], keepdims=True) * (1.0 / float(batch))
        o_ref[...] = (lam * clf + (1.0 - lam) * base).reshape(1, 1, 1)


def get_lambda(i, lambda_clfloss=0.5, increase_until=10000):
    # Mirrors FlipLoss._get_lambda (host-side scalar schedule).
    # TODO(synk): the stateful step counter `self.i += 1` is training-loop
    # bookkeeping; it stays host-side and only its result (lam) reaches the TPU.
    if i >= increase_until:
        return float(lambda_clfloss)
    return float(i) / increase_until * lambda_clfloss


def _pick_tile_b(batch, hidden, itemsize):
    # ~4 MiB per f32 input tile; ~2 MiB for narrower dtypes so the in-kernel
    # f32 upcast temporaries still fit comfortably under v7x's 64 MiB VMEM.
    target_bytes = (4 << 20) if itemsize >= 4 else (2 << 20)
    rows = target_bytes // max(1, hidden * itemsize)
    rows = max(8, min(int(rows), batch))
    if batch > 8:
        rows = max(8, (rows // 8) * 8)        # sublane alignment
    else:
        rows = batch                          # block == full array dim is legal
    return int(rows)


def flip_loss(predicted, true, clf_w, clf_b, lam, *, tile_b=None):
    B, H = predicted.shape
    itemsize = jnp.dtype(predicted.dtype).itemsize
    if tile_b is None:
        tile_b = _pick_tile_b(B, H, itemsize)
    tile_b = int(tile_b)
    if B <= 8:
        tile_b = B
    else:
        tile_b = max(8, (min(tile_b, B) // 8) * 8)

    nb = int(pl.cdiv(B, tile_b))          # total batch tiles
    nb_half = int(pl.cdiv(nb, 2))         # tiles per core-chunk
    grid = (2, nb_half)

    # Runtime scalars -> SMEM (lam changes every training step: must NOT be a
    # compile-time constant).
    lam_arr = jnp.asarray(lam, jnp.float32).reshape((1,))
    b_arr = jnp.asarray(clf_b, jnp.float32).reshape((1,))

    # Classifier weight padded to a full MXU lane tile: column 0 = weights.
    w_col = jnp.asarray(clf_w, jnp.float32).reshape(H, 1)
    w_pad = jnp.pad(w_col, ((0, 0), (0, 127))).astype(predicted.dtype)

    def data_map(c, i):
        # Clamp so an overhanging tile (odd tile count) never indexes past the
        # last block; its contribution is fully masked in the kernel.
        return (jnp.minimum(c * nb_half + i, nb - 1), 0)

    kernel = functools.partial(flip_loss_kernel, batch=B, hidden=H,
                               tile_b=tile_b, nb_half=nb_half)

    # VMEM budget: 2 streamed inputs x 2 pipeline buffers + f32 upcast temps +
    # MXU projection output + padded weight + accumulators; cap at 48 MiB
    # (v7x has 64 MiB/core physical, v5e/v6e have 128 MiB).
    vmem_need = (4 * tile_b * H * itemsize          # double-buffered inputs
                 + 3 * tile_b * H * 4               # f32 temporaries
                 + tile_b * 128 * 4                 # projection output
                 + 2 * H * 128 * itemsize           # padded weight buffers
                 + 2 * tile_b * 128 * 4             # accumulators (lane-padded)
                 + (2 << 20))                       # slack
    vmem_limit = int(min(max(vmem_need, 8 << 20), 48 << 20))

    out = pl.pallas_call(
        kernel,
        out_shape=jax.ShapeDtypeStruct((2, 1, 1), jnp.float32),
        grid=grid,
        in_specs=[
            pl.BlockSpec(memory_space=pltpu.MemorySpace.SMEM),   # lam      (1,)
            pl.BlockSpec(memory_space=pltpu.MemorySpace.SMEM),   # clf bias (1,)
            pl.BlockSpec((tile_b, H), data_map),                 # predicted tile
            pl.BlockSpec((tile_b, H), data_map),                 # true tile
            pl.BlockSpec((H, 128), lambda c, i: (0, 0)),         # padded weight
        ],
        out_specs=pl.BlockSpec((1, 1, 1), lambda c, i: (c, 0, 0)),
        scratch_shapes=[
            pltpu.VMEM((tile_b, 1), jnp.float32),                # per-row sum(diff^2)
            pltpu.VMEM((tile_b, 1), jnp.float32),                # per-row -log(1-p)
        ],
        compiler_params=pltpu.CompilerParams(
            dimension_semantics=("parallel", "arbitrary"),
            vmem_limit_bytes=vmem_limit,
        ),
    )(lam_arr, b_arr, predicted, true, w_pad)
    # Two per-core partial losses; tiny final add in XLA.
    return out[0, 0, 0] + out[1, 0, 0]


def flip_loss_ref(predicted, true, clf_w, clf_b, lam):
    # Pure-JAX reference mirroring the PyTorch module (sigmoid -> BCELoss with
    # its -100 log clamp), same upcast-to-f32 policy.
    pred = predicted.astype(jnp.float32)
    tru = true.astype(jnp.float32)
    base = jnp.mean((pred - tru) ** 2)
    logits = pred @ clf_w.astype(jnp.float32).T + clf_b.astype(jnp.float32)
    p = jax.nn.sigmoid(logits)
    clf = jnp.mean(-jnp.maximum(jnp.log1p(-p), -100.0))
    return lam * clf + (1.0 - lam) * base


if __name__ == "__main__":
    B, H = 20, 128   # B deliberately not a multiple of the tile to exercise masking

    key = jax.random.PRNGKey(0)
    k_pred, k_true, k_w, k_b = jax.random.split(key, 4)

    predicted = jax.random.normal(k_pred, (B, H), dtype=jnp.float32)
    true = jax.random.normal(k_true, (B, H), dtype=jnp.float32)

    # Frozen classifier parameters (nn.Linear(H, 1)), deterministic init.
    clf_w = jax.random.normal(k_w, (1, H), dtype=jnp.float32) / jnp.sqrt(H)
    clf_b = jax.random.normal(k_b, (1,), dtype=jnp.float32) * 0.1

    # Two different training steps -> two different lambdas; lam is a runtime
    # operand, so this does not retrace/recompile the kernel per step.
    for step in (5000, 12000):
        lam = get_lambda(i=step, lambda_clfloss=0.5, increase_until=10000)
        loss = jax.block_until_ready(
            flip_loss(predicted, true, clf_w, clf_b, lam, tile_b=8))
        ref = flip_loss_ref(predicted, true, clf_w, clf_b, lam)
        assert jnp.allclose(loss, ref, rtol=1e-4, atol=1e-5), (step, loss, ref)

    # Default (auto) tile size path.
    lam = get_lambda(i=5000)
    loss_auto = jax.block_until_ready(flip_loss(predicted, true, clf_w, clf_b, lam))
    ref_auto = flip_loss_ref(predicted, true, clf_w, clf_b, lam)
    assert jnp.allclose(loss_auto, ref_auto, rtol=1e-4, atol=1e-5), (loss_auto, ref_auto)

    # bf16 embeddings (production recommendation: kernel is HBM-BW-bound);
    # kernel upcasts to f32 internally, so accuracy is preserved.
    pred_bf = predicted.astype(jnp.bfloat16)
    true_bf = true.astype(jnp.bfloat16)
    loss_bf = jax.block_until_ready(
        flip_loss(pred_bf, true_bf, clf_w, clf_b, lam, tile_b=8))
    ref_bf = flip_loss_ref(pred_bf, true_bf, clf_w, clf_b, lam)
    assert jnp.allclose(loss_bf, ref_bf, rtol=2e-2, atol=2e-3), (loss_bf, ref_bf)

    print("KERNEL_OK")
</pallas_src>

<mosaic_0001>
module attributes {stable_mosaic.version = 11 : i64} {
  func.func @flip_loss_kernel(%arg0: i32, %arg1: i32, %arg2: memref<1xf32, #tpu.memory_space<smem>>, %arg3: memref<1xf32, #tpu.memory_space<smem>>, %arg4: memref<8x128xf32, #tpu.memory_space<vmem>>, %arg5: memref<8x128xf32, #tpu.memory_space<vmem>>, %arg6: memref<128x128xf32, #tpu.memory_space<vmem>>, %arg7: memref<1x1x1xf32, #tpu.memory_space<vmem>>, %arg8: memref<8x1xf32, #tpu.memory_space<vmem>>, %arg9: memref<8x1xf32, #tpu.memory_space<vmem>>) attributes {dimension_semantics = [#tpu.dimension_semantics<parallel>, #tpu.dimension_semantics<arbitrary>], iteration_bounds = array<i64: 2, 2>, scalar_prefetch = 0 : i64, scratch_operands = 2 : i64, tpu.core_type = #tpu.core_type<tc>, window_params = [{transform_indices = @transform_0, window_bounds = array<i64: 1>}, {transform_indices = @transform_1, window_bounds = array<i64: 1>}, {transform_indices = @transform_2, window_bounds = array<i64: 8, 128>}, {transform_indices = @transform_3, window_bounds = array<i64: 8, 128>}, {pipeline_mode = #tpu.pipeline_mode<synchronous>, transform_indices = @transform_4, window_bounds = array<i64: 128, 128>}, {transform_indices = @transform_5, window_bounds = array<i64: 1, 1, 1>}]} {
    %c0_i32 = arith.constant 0 : i32
    %0 = arith.cmpi eq, %arg1, %c0_i32 : i32
    %1 = arith.extui %0 : i1 to i32
    %c0_i32_0 = arith.constant 0 : i32
    %2 = arith.cmpi ne, %1, %c0_i32_0 : i32
    scf.if %2 {
      %cst_16 = arith.constant 0.000000e+00 : f32
      %36 = vector.broadcast %cst_16 : f32 to vector<8x1xf32>
      %c0_17 = arith.constant 0 : index
      %c0_18 = arith.constant 0 : index
      %37 = vector.load %arg8[%c0_17, %c0_18] : memref<8x1xf32, #tpu.memory_space<vmem>>, vector<8x1xf32>
      tpu.vector_store %arg8[%c0_17, %c0_18], %36 {strides = array<i32>} : memref<8x1xf32, #tpu.memory_space<vmem>>, vector<8x1xf32>,
      %cst_19 = arith.constant 0.000000e+00 : f32
      %38 = vector.broadcast %cst_19 : f32 to vector<8x1xf32>
      %c0_20 = arith.constant 0 : index
      %c0_21 = arith.constant 0 : index
      %39 = vector.load %arg9[%c0_20, %c0_21] : memref<8x1xf32, #tpu.memory_space<vmem>>, vector<8x1xf32>
      tpu.vector_store %arg9[%c0_20, %c0_21], %38 {strides = array<i32>} : memref<8x1xf32, #tpu.memory_space<vmem>>, vector<8x1xf32>,
    } else {
    }
    %c0 = arith.constant 0 : index
    %c0_1 = arith.constant 0 : index
    %3 = vector.load %arg4[%c0, %c0_1] : memref<8x128xf32, #tpu.memory_space<vmem>>, vector<8x128xf32>
    %c0_2 = arith.constant 0 : index
    %c0_3 = arith.constant 0 : index
    %4 = vector.load %arg5[%c0_2, %c0_3] : memref<8x128xf32, #tpu.memory_space<vmem>>, vector<8x128xf32>
    %5 = arith.subf %3, %4 : vector<8x128xf32>
    %6 = arith.mulf %5, %5 : vector<8x128xf32>
    %cst = arith.constant dense<0.000000e+00> : vector<8xf32>
    %7 = vector.multi_reduction <add>, %6, %cst [1] : vector<8x128xf32> to vector<8xf32>
    %8 = vector.shape_cast %7 : vector<8xf32> to vector<8x1xf32>
    %c0_4 = arith.constant 0 : index
    %c0_5 = arith.constant 0 : index
    %9 = vector.load %arg6[%c0_4, %c0_5] : memref<128x128xf32, #tpu.memory_space<vmem>>, vector<128x128xf32>
    %cst_6 = arith.constant dense<0.000000e+00> : vector<8x128xf32>
    %10 = tpu.matmul %3, %9, %cst_6 {dimension_numbers = #tpu.dot_dimension_numbers<[1], [0], [0], [1], [0, 0, 1, 1], [], []>} : vector<8x128xf32>, vector<128x128xf32>, vector<8x128xf32> -> vector<8x128xf32>
    %11 = vector.extract_strided_slice %10 {offsets = [0, 0], sizes = [8, 1], strides = [1, 1]} : vector<8x128xf32> to vector<8x1xf32>
    %c0_7 = arith.constant 0 : index
    %12 = memref.load %arg3[%c0_7] : memref<1xf32, #tpu.memory_space<smem>>
    %13 = vector.broadcast %12 : f32 to vector<8x1xf32>
    %14 = arith.addf %11, %13 : vector<8x1xf32>
    %cst_8 = arith.constant 0.000000e+00 : f32
    %15 = vector.broadcast %cst_8 : f32 to vector<8x1xf32>
    %16 = arith.maximumf %14, %15 : vector<8x1xf32>
    %17 = math.absf %14 : vector<8x1xf32>
    %cst_9 = arith.constant 0.000000e+00 : f32
    %18 = vector.broadcast %cst_9 : f32 to vector<8x1xf32>
    %19 = arith.subf %18, %17 : vector<8x1xf32>
    %20 = math.exp %19 : vector<8x1xf32>
    %21 = math.log1p %20 : vector<8x1xf32>
    %22 = arith.addf %16, %21 : vector<8x1xf32>
    %cst_10 = arith.constant 1.000000e+02 : f32
    %23 = vector.broadcast %cst_10 : f32 to vector<8x1xf32>
    %24 = arith.minimumf %22, %23 : vector<8x1xf32>
    %c2_i32 = arith.constant 2 : i32
    %25 = arith.muli %arg0, %c2_i32 : i32
    %26 = arith.addi %25, %arg1 : i32
    %c2_i32_11 = arith.constant 2 : i32
    %27 = arith.cmpi slt, %26, %c2_i32_11 : i32
    %28 = arith.extui %27 : i1 to i32
    %c0_i32_12 = arith.constant 0 : i32
    %29 = arith.cmpi ne, %28, %c0_i32_12 : i32
    scf.if %29 {
      %c0_16 = arith.constant 0 : index
      %c0_17 = arith.constant 0 : index
      %36 = vector.load %arg8[%c0_16, %c0_17] : memref<8x1xf32, #tpu.memory_space<vmem>>, vector<8x1xf32>
      %37 = arith.addf %36, %8 : vector<8x1xf32>
      %c0_18 = arith.constant 0 : index
      %c0_19 = arith.constant 0 : index
      %38 = vector.load %arg8[%c0_18, %c0_19] : memref<8x1xf32, #tpu.memory_space<vmem>>, vector<8x1xf32>
      tpu.vector_store %arg8[%c0_18, %c0_19], %37 {strides = array<i32>} : memref<8x1xf32, #tpu.memory_space<vmem>>, vector<8x1xf32>,
      %c0_20 = arith.constant 0 : index
      %c0_21 = arith.constant 0 : index
      %39 = vector.load %arg9[%c0_20, %c0_21] : memref<8x1xf32, #tpu.memory_space<vmem>>, vector<8x1xf32>
      %40 = arith.addf %39, %24 : vector<8x1xf32>
      %c0_22 = arith.constant 0 : index
      %c0_23 = arith.constant 0 : index
      %41 = vector.load %arg9[%c0_22, %c0_23] : memref<8x1xf32, #tpu.memory_space<vmem>>, vector<8x1xf32>
      tpu.vector_store %arg9[%c0_22, %c0_23], %40 {strides = array<i32>} : memref<8x1xf32, #tpu.memory_space<vmem>>, vector<8x1xf32>,
    } else {
    }
    %c2_i32_13 = arith.constant 2 : i32
    %30 = arith.cmpi sge, %26, %c2_i32_13 : i32
    %31 = arith.extui %30 : i1 to i32
    %c0_i32_14 = arith.constant 0 : i32
    %32 = arith.cmpi ne, %31, %c0_i32_14 : i32
    scf.if %32 {
      %c8_i32 = arith.constant 8 : i32
      %36 = arith.muli %26, %c8_i32 : i32
      %37 = tpu.iota {dimensions = array<i32: 0>} : vector<8x1xi32>
      %38 = vector.broadcast %36 : i32 to vector<8x1xi32>
      %39 = arith.addi %38, %37 : vector<8x1xi32>
      %c20_i32 = arith.constant 20 : i32
      %40 = vector.broadcast %c20_i32 : i32 to vector<8x1xi32>
      %41 = arith.cmpi slt, %39, %40 : vector<8x1xi32>
      %c0_16 = arith.constant 0 : index
      %c0_17 = arith.constant 0 : index
      %42 = vector.load %arg8[%c0_16, %c0_17] : memref<8x1xf32, #tpu.memory_space<vmem>>, vector<8x1xf32>
      %cst_18 = arith.constant 0.000000e+00 : f32
      %43 = vector.broadcast %cst_18 : f32 to vector<8x1xf32>
      %44 = arith.select %41, %8, %43 : vector<8x1xi1>, vector<8x1xf32>
      %45 = arith.addf %42, %44 : vector<8x1xf32>
      %c0_19 = arith.constant 0 : index
      %c0_20 = arith.constant 0 : index
      %46 = vector.load %arg8[%c0_19, %c0_20] : memref<8x1xf32, #tpu.memory_space<vmem>>, vector<8x1xf32>
      tpu.vector_store %arg8[%c0_19, %c0_20], %45 {strides = array<i32>} : memref<8x1xf32, #tpu.memory_space<vmem>>, vector<8x1xf32>,
      %c0_21 = arith.constant 0 : index
      %c0_22 = arith.constant 0 : index
      %47 = vector.load %arg9[%c0_21, %c0_22] : memref<8x1xf32, #tpu.memory_space<vmem>>, vector<8x1xf32>
      %cst_23 = arith.constant 0.000000e+00 : f32
      %48 = vector.broadcast %cst_23 : f32 to vector<8x1xf32>
      %49 = arith.select %41, %24, %48 : vector<8x1xi1>, vector<8x1xf32>
      %50 = arith.addf %47, %49 : vector<8x1xf32>
      %c0_24 = arith.constant 0 : index
      %c0_25 = arith.constant 0 : index
      %51 = vector.load %arg9[%c0_24, %c0_25] : memref<8x1xf32, #tpu.memory_space<vmem>>, vector<8x1xf32>
      tpu.vector_store %arg9[%c0_24, %c0_25], %50 {strides = array<i32>} : memref<8x1xf32, #tpu.memory_space<vmem>>, vector<8x1xf32>,
    } else {
    }
    %c1_i32 = arith.constant 1 : i32
    %33 = arith.cmpi eq, %arg1, %c1_i32 : i32
    %34 = arith.extui %33 : i1 to i32
    %c0_i32_15 = arith.constant 0 : i32
    %35 = arith.cmpi ne, %34, %c0_i32_15 : i32
    scf.if %35 {
      %c0_16 = arith.constant 0 : index
      %36 = memref.load %arg2[%c0_16] : memref<1xf32, #tpu.memory_space<smem>>
      %c0_17 = arith.constant 0 : index
      %c0_18 = arith.constant 0 : index
      %37 = vector.load %arg8[%c0_17, %c0_18] : memref<8x1xf32, #tpu.memory_space<vmem>>, vector<8x1xf32>
      %38 = vector.shape_cast %37 : vector<8x1xf32> to vector<1x8x1xf32>
      %cst_19 = arith.constant dense<0.000000e+00> : vector<1xf32>
      %39 = vector.multi_reduction <add>, %38, %cst_19 [1, 2] : vector<1x8x1xf32> to vector<1xf32>
      %40 = vector.shape_cast %39 : vector<1xf32> to vector<1x1x1xf32>
      %41 = vector.extract %40[0, 0, 0] : f32 from vector<1x1x1xf32>
      %42 = vector.broadcast %41 : f32 to vector<1x1xf32>
      %cst_20 = arith.constant 3.906250e-04 : f32
      %43 = vector.broadcast %cst_20 : f32 to vector<1x1xf32>
      %44 = arith.mulf %42, %43 : vector<1x1xf32>
      %c0_21 = arith.constant 0 : index
      %c0_22 = arith.constant 0 : index
      %45 = vector.load %arg9[%c0_21, %c0_22] : memref<8x1xf32, #tpu.memory_space<vmem>>, vector<8x1xf32>
      %46 = vector.shape_cast %45 : vector<8x1xf32> to vector<1x8x1xf32>
      %cst_23 = arith.constant dense<0.000000e+00> : vector<1xf32>
      %47 = vector.multi_reduction <add>, %46, %cst_23 [1, 2] : vector<1x8x1xf32> to vector<1xf32>
      %48 = vector.shape_cast %47 : vector<1xf32> to vector<1x1x1xf32>
      %49 = vector.extract %48[0, 0, 0] : f32 from vector<1x1x1xf32>
      %50 = vector.broadcast %49 : f32 to vector<1x1xf32>
      %cst_24 = arith.constant 5.000000e-02 : f32
      %51 = vector.broadcast %cst_24 : f32 to vector<1x1xf32>
      %52 = arith.mulf %50, %51 : vector<1x1xf32>
      %53 = vector.broadcast %36 : f32 to vector<1x1xf32>
      %54 = arith.mulf %53, %52 : vector<1x1xf32>
      %cst_25 = arith.constant 1.000000e+00 : f32
      %55 = arith.subf %cst_25, %36 : f32
      %56 = vector.broadcast %55 : f32 to vector<1x1xf32>
      %57 = arith.mulf %56, %44 : vector<1x1xf32>
      %58 = arith.addf %54, %57 : vector<1x1xf32>
      %59 = vector.shape_cast %58 : vector<1x1xf32> to vector<1x1x1xf32>
      %c0_26 = arith.constant 0 : index
      %c0_27 = arith.constant 0 : index
      %c0_28 = arith.constant 0 : index
      %60 = vector.load %arg7[%c0_26, %c0_27, %c0_28] : memref<1x1x1xf32, #tpu.memory_space<vmem>>, vector<1x1x1xf32>
      tpu.vector_store %arg7[%c0_26, %c0_27, %c0_28], %59 {strides = array<i32>} : memref<1x1x1xf32, #tpu.memory_space<vmem>>, vector<1x1x1xf32>,
    } else {
    }
    return
  }
  func.func @transform_0(%arg0: i32, %arg1: i32) -> i32 {
    %c0_i32 = arith.constant 0 : i32
    %c0_i32_0 = arith.constant 0 : i32
    return %c0_i32 : i32
  }
  func.func @transform_1(%arg0: i32, %arg1: i32) -> i32 {
    %c0_i32 = arith.constant 0 : i32
    %c0_i32_0 = arith.constant 0 : i32
    return %c0_i32 : i32
  }
  func.func @transform_2(%arg0: i32, %arg1: i32) -> (i32, i32) {
    %c2_i32 = arith.constant 2 : i32
    %0 = arith.muli %arg0, %c2_i32 : i32
    %1 = arith.addi %0, %arg1 : i32
    %c2_i32_0 = arith.constant 2 : i32
    %2 = arith.minsi %1, %c2_i32_0 : i32
    %c0_i32 = arith.constant 0 : i32
    %c0_i32_1 = arith.constant 0 : i32
    return %2, %c0_i32 : i32, i32
  }
  func.func @transform_3(%arg0: i32, %arg1: i32) -> (i32, i32) {
    %c2_i32 = arith.constant 2 : i32
    %0 = arith.muli %arg0, %c2_i32 : i32
    %1 = arith.addi %0, %arg1 : i32
    %c2_i32_0 = arith.constant 2 : i32
    %2 = arith.minsi %1, %c2_i32_0 : i32
    %c0_i32 = arith.constant 0 : i32
    %c0_i32_1 = arith.constant 0 : i32
    return %2, %c0_i32 : i32, i32
  }
  func.func @transform_4(%arg0: i32, %arg1: i32) -> (i32, i32) {
    %c0_i32 = arith.constant 0 : i32
    %c0_i32_0 = arith.constant 0 : i32
    %c0_i32_1 = arith.constant 0 : i32
    return %c0_i32, %c0_i32_0 : i32, i32
  }
  func.func @transform_5(%arg0: i32, %arg1: i32) -> (i32, i32, i32) {
    %c0_i32 = arith.constant 0 : i32
    %c0_i32_0 = arith.constant 0 : i32
    %c0_i32_1 = arith.constant 0 : i32
    return %arg0, %c0_i32, %c0_i32_0 : i32, i32, i32
  }
}

</mosaic_0001>

<bundles_post_ra>
// kernel: tpu_custom_call.1
= control target key start
LH: loop header
LB: loop body
LE: loop exit
PB: predicated region body
PF: predicated region fallthrough
CT: control target
= control target key end

     0   :  { %s1084_s0 = inlined_call_operand.<no memory space> [shape: f32[1], index: 0, kind: input, shape index: {}]   ;;  %s1085_s1 = inlined_call_operand.<no memory space> [shape: f32[1], index: 1, kind: input, shape index: {}]   ;;  %s1086_s2 = inlined_call_operand.hbm [shape: f32[20,128], index: 2, kind: input, shape index: {}]   ;;  %s1087_s3 = inlined_call_operand.hbm [shape: f32[20,128], index: 3, kind: input, shape index: {}]   ;;  %s1088_s4 = inlined_call_operand.hbm [shape: f32[128,128], index: 4, kind: input, shape index: {}]   ;;  %s1089_s5 = inlined_call_operand.vmem [shape: f32[2,1,1], index: 5, kind: output, shape index: {}]  }
   0x1   :  { %1093 = sst [smem:[#allocation16_spill]] %s1088_s4 }
   0x2   :  { %10 = sst [smem:[#allocation4]] %s1084_s0 }
   0x3   :  { %11 = sst [smem:[#allocation5]] %s1085_s1 }
   0x4   :  { %12 = vsyncpa [#allocation7], 0 }
   0x5   :  { %14 = vsyncpa [#allocation7 + $0x1], 0 }
   0x6   :  { %15 = vsyncpa [#allocation9], 0 }
   0x7   :  { %17 = vsyncpa [#allocation9 + $0x1], 0  ;;  %s914_s22 = smov 0   ;;  %s916_s23 = smov 0  }
   0x8   :  { %s918_s24 = smov 0   ;;  %s920_s25 = smov 0  }
   0x9   :  { %s922_s26 = smov 0   ;;  %s924_s27 = smov 0  }
   0xa   :  { %s926_s0 = smov 0   ;;  %s928_s28 = smov 0  }
   0xb LB: > { %s1090_s1 = sadd.s32 4294967295, %s872_s28   ;;  %p589_p0 = scmp.ge.s32.totalorder %s872_s28, 1  ;;  %s872_s28 = sphi %s928_s28, %s23_s28   ;;  %s868_s0 = sphi %s926_s0, %s1110_s0   ;;  %s864_s27 = sphi %s924_s27, %s1109_s27   ;;  %s860_s26 = sphi %s922_s26, %s1108_s26   ;;  %s856_s25 = sphi %s920_s25, %s1107_s25   ;;  %s852_s24 = sphi %s918_s24, %s1106_s24   ;;  %s848_s23 = sphi %s916_s23, %s1105_s23   ;;  %s844_s22 = sphi %s914_s22, %s1104_s22  }
   0xc   : > { %p958_p1 = scmp.eq.s32.totalorder %s1090_s1, 0  ;;  %p197_p2 = scmp.lt.s32.totalorder %s872_s28, 5 }
   0xd   : > { %s1095_s4 = sld [smem:[#allocation16_spill]]  ;;  %s874_s9 = smov [#allocation10]  }
   0xe   : > { %p966_p3 = pnand %p589_p0, %p197_p2  ;;  %s216_s10 = sshll.u32 %s874_s9, 4  ;;  %s217_s10 = int_to_ptr.vmem [resolvable:$true] %s216_s10 }
   0xf   : > { %s875_s11 = smov 128   ;;  %s876_s12 = smov 8  }
  0x10   : > { %p622_p4 = pneg %p966_p3  ;;  %s32_s13 = sadd.s32 1, %s864_s27 }
  0x11   : > { %p33_p6 = scmp.ge.s32.totalorder %s32_s13, 2  ;;  %s35_s14 = sadd.s32 1, %s868_s0 }
  0x12   : > { %p623_p5 = pnand %p622_p4, %p958_p1  ;;  %s585_s15 = sshll.u32 %s868_s0, 1 }
  0x13   : > { %s214_s7 = sshll.u32 %s1095_s4, 4  ;;  %s92_s16 = sadd.s32 1, %s852_s24  ;;  %s215_s7 = int_to_ptr.hbm [resolvable:$true] %s214_s7 }
  0x14   : > { %625 = dma.hbm_to_vmem [thread:$0]  (!%p623_p5), %s215_s7, 2048, %s217_s10, [#allocation9], %s875_s11, %s875_s11, %s876_s12  }
  0x15   : > { %s1112_s13 = smov (%p33_p6, %s32_s13), 0  ;;  %s1114_s14 = smov (!%p33_p6, %s35_s14), %s868_s0 }
  0x16   : > { %1097 = sst [smem:[#allocation14_spill]] %s1112_s13  ;;  %s82_s17 = sadd.s32 %s864_s27, %s585_s15 }
  0x17   : > { %p99_p7 = scmp.ne.s32.totalorder %s852_s24, %s848_s23  ;;  %p37_p8 = scmp.ge.s32.totalorder %s1114_s14, 2 }
  0x18   : > { %p83_p9 = scmp.lt.s32.totalorder %s82_s17, 2  ;;  %p100_p10 = scmp.eq.s32.totalorder %s872_s28, 0 }
  0x19   : > { %p105_p11 = scmp.ne.s32.totalorder %s848_s23, %s844_s22  ;;  %s1116_s14 = smov (%p37_p8, %s1114_s14), 0 }
  0x1a   : > { %1098 = sst [smem:[#allocation15_spill]] %s1116_s14  ;;  %s1118_s17 = smov (!%p83_p9, %s82_s17), 2 }
  0x1b   : > { %s586_s18 = sshll.u32 %s1116_s14, 1  ;;  %p990_p12 = por %p100_p10, %p99_p7 }
  0x1c   : > { %s86_s20 = sadd.s32 %s586_s18, %s1112_s13  ;;  %p997_p13 = por %p958_p1, %p105_p11 }
  0x1d   : > { %p87_p0 = scmp.lt.s32.totalorder %s86_s20, 2  ;;  %p634_p2 = scmp.lt.s32.totalorder %s872_s28, 4 }
  0x1e   : > { %s230_s22 = sand.u32 1, %s852_s24   ;;  %s594_s30 = sshll.u32 %s1118_s17, 3 }
  0x1f   : > { %s1120_s20 = smov (!%p87_p0, %s86_s20), 2  ;;  %s592_s6 = sshll.u32 %s230_s22, 3 }
  0x20   : > { %s89_s7 = ssub.s32 %s1118_s17, %s1120_s20  ;;  %s242_s11 = scalar_lea.hbm %s1086_s2, %s594_s30 }
  0x21   : > { %p90_p4 = scmp.eq.s32.totalorder %s89_s7, 0  ;;  %s244_s12 = sshll.u32 %s242_s11, 4  ;;  %s245_s12 = int_to_ptr.hbm [resolvable:$true] %s244_s12 }
  0x22   : > { %s234_s15 = scalar_lea.vmem [#allocation6], %s592_s6  ;;  %p627_p5 = pnand %p634_p2, %p990_p12 }
  0x23   : > { %s246_s18 = sshll.u32 %s234_s15, 4  ;;  %s265_s13 = scalar_lea.hbm %s1087_s3, %s594_s30  ;;  %s247_s18 = int_to_ptr.vmem [resolvable:$true] %s246_s18 }
  0x24   : > { %s1007_s1 = scalar_select %p90_p4, %s852_s24, %s92_s16  }
  0x25   : > { %s253_s17 = sand.u32 1, %s872_s28   ;;  %s231_s20 = scalar_lea.sflag [#allocation7], %s230_s22 }
  0x26   : > { %629 = dma.hbm_to_vmem [thread:$0]  (!%p627_p5), %s245_s12, 128, %s247_s18, %s231_s20  }
  0x27   : > { %s267_s7 = sshll.u32 %s265_s13, 4  ;;  %s257_s9 = scalar_lea.vmem [#allocation8], %s592_s6  ;;  %s268_s7 = int_to_ptr.hbm [resolvable:$true] %s267_s7 }
  0x28   : > { %s269_s10 = sshll.u32 %s257_s9, 4  ;;  %s254_s11 = scalar_lea.sflag [#allocation9], %s253_s17  ;;  %s270_s10 = int_to_ptr.vmem [resolvable:$true] %s269_s10 }
  0x29   : > { %632 = dma.hbm_to_vmem [thread:$0]  (!%p627_p5), %s268_s7, 128, %s270_s10, %s254_s11  }
  0x2a   : > { %278 = sbr.rel (%p966_p3) target bundleno = 480 (0x1e0), region = 40  ;;  %s280_s16 = sand.u32 (!%p966_p3), 1, %s848_s23  }
  0x2b   : > { %s1020_s19 = sshll.u32 (!%p966_p3), %s280_s16, 3  ;;  %s281_s4 = scalar_lea.sflag (!%p966_p3), [#allocation7], %s280_s16 }
  0x2c   : > { %s284_s14 = scalar_lea.vmem (!%p966_p3), [#allocation6], %s1020_s19 }
  0x2f   : > { %831 = dma.done.wait (%p997_p13), %s281_s4, 128  }
  0x30   : > { %833 = vsyncadd (%p997_p13), %s281_s4, 4294967168  ;;  %s1101_s13 = sadd.s32 4294967295, %s872_s28   ;;  %s294_s30 = scalar_lea.vmem [#allocation8], %s1020_s19 }
  0x31   : > { %s290_s22 = sand.u32 1, %s1101_s13  }
  0x32   : > { %s291_s8 = scalar_lea.sflag [#allocation9], %s290_s22 }
  0x33   : > { %835 = dma.done.wait (%p997_p13), %s291_s8, 128  }
  0x34   : > { %837 = vsyncadd (%p997_p13), %s291_s8, 4294967168 }
  0x35   : > { %839 = dma.done.wait (%p958_p1), [#allocation9], 2048  }
  0x36   : > { %841 = vsyncadd (%p958_p1), [#allocation9], 4294965248  ;;  %p338_p3 = scmp.lt.s32.totalorder %s860_s26, 1  ;;  %p602_p6 = scmp.ne.s32.totalorder %s856_s25, 0 }
  0x38   : > { %s1040_s6 = scalar_select %p338_p3, %s860_s26, 1 }
  0x39   : > { %344 = sbr.rel (%p602_p6) target bundleno = 65 (0x41), region = 56 }
  0x3a   : > { %s340_s18 = scalar_lea.vmem %s1089_s5, %s1040_s6 }
  0x3e   : > { %vm345_vm0 = vcmask 7168   ;;  %v877_v0 = vmov 0.0  }
  0x3f   : > { %346 = vst.msk [vmem:[#allocation2] sm:$0xff] %vm345_vm0, %v877_v0 }
  0x40   : > { %347 = vst.msk [vmem:[#allocation3] sm:$0xff] %vm345_vm0, %v877_v0 }
  0x41 PF: > { %v369_v1 = vld [vmem:[#allocation10 + $0x78] sm:$0xff]  ;;  %v368_v2 = vld [vmem:[#allocation10 + $0x70] sm:$0xff]  ;;  %v367_v3 = vld [vmem:[#allocation10 + $0x68] sm:$0xff]  ;;  %s603_s29 = sshll.u32 %s860_s26, 1  ;;  %s390_s17 = sld [smem:[#allocation5]] }
  0x42   : > { %370 = vmatpush.msra.mxu0 %v369_v1  ;;  %v366_v4 = vld [vmem:[#allocation10 + $0x60] sm:$0xff]  ;;  %v349_v6 = vld [vmem:[%s294_s30] sm:$0xff]  ;;  %v363_v11 = vld [vmem:[#allocation10 + $0x48] sm:$0xff]  ;;  %s1049_s21 = sadd.s32 %s856_s25, %s603_s29 }
  0x43   : > { %v348_v5 = vld [vmem:[%s284_s14] sm:$0xff]  ;;  %v365_v7 = vld [vmem:[#allocation10 + $0x58] sm:$0xff]  ;;  %v364_v9 = vld [vmem:[#allocation10 + $0x50] sm:$0xff]  ;;  %p604_p1 = scmp.ge.s32.totalorder %s1049_s21, 2 }
  0x44   : > { %371 = vmatpush.msra.mxu0 %v368_v2  ;;  %v350_v8 = vsub.f32 %v348_v5, %v349_v6  ;;  %v362_v12 = vld [vmem:[#allocation10 + $0x40] sm:$0xff]  ;;  %v361_v13 = vld [vmem:[#allocation10 + $0x38] sm:$0xff]  ;;  %v360_v14 = vld [vmem:[#allocation10 + $0x30] sm:$0xff] }
  0x45   : > { %v359_v15 = vld [vmem:[#allocation10 + $0x28] sm:$0xff]  ;;  %v358_v16 = vld [vmem:[#allocation10 + $0x20] sm:$0xff]  ;;  %v357_v17 = vld [vmem:[#allocation10 + $0x18] sm:$0xff] }
  0x46   : > { %372 = vmatpush.msra.mxu0 %v367_v3  ;;  %v351_v10 = vmul.f32 %v350_v8, %v350_v8  ;;  %v356_v18 = vld [vmem:[#allocation10 + $0x10] sm:$0xff]  ;;  %v355_v19 = vld [vmem:[#allocation10 + $0x8] sm:$0xff]  ;;  %v354_v20 = vld [vmem:[#allocation10] sm:$0xff] }
  0x47   : > { %v391_v21 = vstv %s390_s17 }
  0x48   : > { %373 = vmatpush.msra.mxu0 %v366_v4  ;;  %352 = vadd.xlane.f32.xlu0 %v351_v10 }
  0x4a   : > { %374 = vmatpush.msra.mxu0 %v365_v7 }
  0x4c   : > { %375 = vmatpush.msra.mxu0 %v364_v9 }
  0x4e   : > { %376 = vmatpush.msra.mxu0 %v363_v11 }
  0x50   : > { %377 = vmatpush.msra.mxu0 %v362_v12 }
  0x52   : > { %378 = vmatpush.msra.mxu0 %v361_v13 }
  0x54   : > { %379 = vmatpush.msra.mxu0 %v360_v14 }
  0x56   : > { %380 = vmatpush.msra.mxu0 %v359_v15 }
  0x58   : > { %381 = vmatpush.msra.mxu0 %v358_v16 }
  0x5a   : > { %382 = vmatpush.msra.mxu0 %v357_v17 }
  0x5c   : > { %383 = vmatpush.msra.mxu0 %v356_v18 }
  0x5e   : > { %384 = vmatpush.msra.mxu0 %v355_v19 }
  0x60   : > { %385 = vmatpush.msra.mxu0 %v354_v20 }
  0x61   : > { %386 = vmatmul.f32.vlgmr.msra.gmra.mxu0 %v348_v5 }
  0xbb   : > { %v353_v22 = vpop.xlane.xlu0 %352 }
  0xde   : > { %v387_v23 = vpop.f32.mrf.mxu0 }
  0xdf   : > { %v392_v24 = vadd.f32 %v391_v21, %v387_v23 }
  0xe1   : > { %v394_v25 = vand.u32 2147483647, %v392_v24  ;;  %v393_v36 = vmax.f32 %v392_v24, 0.0 }
  0xe3   : > { %v395_v26 = vsub.f32 0.0, %v394_v25 }
  0xe5   : > { %v396_v27 = vmul.f32 1.442695, %v395_v26 }
  0xe7   : > { %704 = vpow2.f32 %v396_v27 }
  0xed   : > { %v705_v28 = vpop.eup %704 }
  0xee   : > { %v398_v29 = vadd.f32 1.0, %v705_v28  ;;  %v401_v30 = vmul.f32 -0.5, %v705_v28  ;;  %v404_v32 = vand.u32 2147483647, %v705_v28 }
  0xf0   : > { %706 = vlog2.f32 %v398_v29  ;;  %v402_v31 = vadd.f32 1.0, %v401_v30  ;;  %vm405_vm1 = vcmp.lt.f32.partialorder %v404_v32, 0.0004427343 }
  0xf2   : > { %v403_v35 = vmul.f32 %v705_v28, %v402_v31 }
  0xf6   : > { %v707_v33 = vpop.eup %706 }
  0xf7   : > { %v400_v34 = vmul.f32 0.6931472, %v707_v33 }
  0xf8   : > { %414 = sbr.rel (%p604_p1) target bundleno = 258 (0x102), region = 60 }
  0xf9   : > { %v406_v37 = vsel %vm405_vm1, %v403_v35, %v400_v34 }
  0xfa   : > { %v407_v38 = vadd.f32 %v406_v37, %v393_v36 }
  0xfc   : > { %v408_v39 = vmin.f32 %v407_v38, 100.0 }
  0xfd   : > { %v415_v40 = vld [vmem:[#allocation2] sm:$0xff]  ;;  %vm417_vm2 = vcmask 7168   ;;  %v419_v41 = vld [vmem:[#allocation3] sm:$0xff] }
  0xfe   : > { %v416_v42 = vadd.f32 %v415_v40, %v353_v22  ;;  %v420_v43 = vadd.f32 %v419_v41, %v408_v39 }
 0x100   : > { %418 = vst.msk [vmem:[#allocation2] sm:$0xff] %vm417_vm2, %v416_v42 }
 0x101   : > { %421 = vst.msk [vmem:[#allocation3] sm:$0xff] %vm417_vm2, %v420_v43 }
 0x102 PF: > { %p605_p7 = scmp.lt.s32.totalorder %s1049_s21, 2 }
 0x103   : > { %s606_s26 = sshll.u32 (!%p605_p7), %s1049_s21, 3 }
 0x104   : > { %425 = sbr.rel (%p605_p7) target bundleno = 277 (0x115), region = 64 }
 0x109   : > { %v427_v44 = vlaneseq  ;;  %v429_v45 = vstv %s606_s26  ;;  %v432_v48 = vld [vmem:[#allocation2] sm:$0xff]  ;;  %v437_v49 = vld [vmem:[#allocation3] sm:$0xff]  ;;  %vm435_vm4 = vcmask 7168  }
 0x10b   : > { %v428_v46 = vshrl.u32 %v427_v44, 7 }
 0x10d   : > { %v430_v47 = vadd.s32 %v429_v45, %v428_v46 }
 0x10f   : > { %vm431_vm3 = vcmp.lt.s32.totalorder %v430_v47, 20 }
 0x110   : > { %v433_v50 = vsel %vm431_vm3, %v353_v22, 0.0  ;;  %v438_v51 = vsel %vm431_vm3, %v408_v39, 0.0 }
 0x111   : > { %v434_v52 = vadd.f32 %v433_v50, %v432_v48  ;;  %v439_v53 = vadd.f32 %v438_v51, %v437_v49 }
 0x113   : > { %436 = vst.msk [vmem:[#allocation2] sm:$0xff] %vm435_vm4, %v434_v52 }
 0x114   : > { %440 = vst.msk [vmem:[#allocation3] sm:$0xff] %vm435_vm4, %v439_v53 }
 0x115 PF: > { %p607_p8 = scmp.ne.s32.totalorder %s856_s25, 1 }
 0x116   : > { %s445_s25 = sld [smem:[#allocation4]] (!%p607_p8) }
 0x117   : > { %444 = sbr.rel (%p607_p8) target bundleno = 480 (0x1e0), region = 68 }
 0x11c   : > { %v446_v54 = vld [vmem:[#allocation2] sm:$0xff]  ;;  %vm447_vm5 = vcmask 7168   ;;  %v460_v56 = vld [vmem:[#allocation3] sm:$0xff]  ;;  %s475_s7 = ssub.f32 1.0, %s445_s25  ;;  %v473_v12 = vstv %s445_s25  ;;  %vm479_vm6 = vcmask 0  }
 0x11d   : > { %v448_v55 = vsel %vm447_vm5, %v446_v54, 0.0  ;;  %v461_v57 = vsel %vm447_vm5, %v460_v56, 0.0 }
 0x11e   : > { %449 = vadd.xlane.f32.xlu0 %v448_v55  ;;  %v476_v10 = vstv %s475_s7 }
 0x126   : > { %462 = vadd.xlane.f32.xlu0 %v461_v57 }
 0x191   : > { %v450_v58 = vpop.xlane.xlu0 %449 }
 0x192   : > { %v451_v59 = vrot.slane %v450_v58, 4 }
 0x194   : > { %v452_v60 = vadd.f32 %v451_v59, %v450_v58 }
 0x196   : > { %v453_v61 = vrot.slane %v452_v60, 2 }
 0x198   : > { %v454_v62 = vadd.f32 %v453_v61, %v452_v60 }
 0x199   : > { %v463_v63 = vpop.xlane.xlu0 %462 }
 0x19a   : > { %v464_v0 = vrot.slane %v463_v63, 4  ;;  %v455_v1 = vrot.slane %v454_v62, 1 }
 0x19c   : > { %v465_v2 = vadd.f32 %v464_v0, %v463_v63  ;;  %v456_v3 = vadd.f32 %v455_v1, %v454_v62 }
 0x19e   : > { %v466_v4 = vrot.slane %v465_v2, 2  ;;  %610 = vpush %v456_v3 }
 0x1a0   : > { %v467_v5 = vadd.f32 %v466_v4, %v465_v2 }
 0x1a2   : > { %v468_v6 = vrot.slane %v467_v5, 1 }
 0x1a4   : > { %v469_v7 = vadd.f32 %v468_v6, %v467_v5 }
 0x1a6   : > { %612 = vpush %v469_v7 }
 0x1cf   : > { %s611_s20 = spop %610 }
 0x1d0   : > { %v458_v8 = vstv %s611_s20 }
 0x1d1   : > { %v459_v9 = vmul.f32 0.000390625, %v458_v8 }
 0x1d3   : > { %v477_v14 = vmul.f32 %v476_v10, %v459_v9 }
 0x1d7   : > { %s613_s9 = spop %612 }
 0x1d8   : > { %v471_v11 = vstv %s613_s9 }
 0x1d9   : > { %v472_v13 = vmul.f32 0.05, %v471_v11 }
 0x1db   : > { %v474_v15 = vmul.f32 %v473_v12, %v472_v13 }
 0x1dd   : > { %v478_v16 = vadd.f32 %v477_v14, %v474_v15 }
 0x1df   : > { %480 = vst.msk [vmem:[%s340_s18] sm:$0x1] %vm479_vm6, %v478_v16 }
 0x1e0 PF: > { %s23_s28 = sadd.s32 1, %s872_s28   ;;  %s1102_s16 = sld [smem:[#allocation14_spill]] }
 0x1e1   : > { %p20_p9 = scmp.ge.s32.totalorder %s23_s28, 6   ;;  %s1103_s19 = sld [smem:[#allocation15_spill]] }
 0x1e2   : > { %s1104_s22 = smov %s848_s23  ;;  %s1105_s23 = smov %s852_s24 }
 0x1e3   : > { %s1106_s24 = smov %s1007_s1  ;;  %s1107_s25 = smov %s864_s27 }
 0x1e4   : > { %s1108_s26 = smov %s868_s0  ;;  %22 = sbr.rel (!%p20_p9) target bundleno = 11 (0xb), region = 113 }
 0x1e6   : > { %s1109_s27 = smov %s1102_s16 }
 0x1e7   : > { %s1110_s0 = smov %s1103_s19 }
 0x1e9   :  { %498 = vsyncpa [#allocation7], 1 }
 0x1ea   :  { %500 = vsyncpa [#allocation7 + $0x1], 1 }
 0x1eb   :  { %501 = vsyncpa [#allocation9], 1 }
 0x1ec   :  { %503 = vsyncpa [#allocation9 + $0x1], 1 }

</bundles_post_ra>
